<compile_context>
chip_gen: v5e
topology: v5e:2x2
jax: 0.10.0
libtpu: 0.0.40
codegen_flags: <defaults>
</compile_context>

<pallas_src>
import jax
import jax.numpy as jnp
from jax.experimental import pallas as pl
from jax.experimental.pallas import tpu as pltpu


# ----------------------------------------------------------------------------
# Fused Pallas kernel: the whole (folded) model is one matvec + bias
# ----------------------------------------------------------------------------
def _affine_kernel(x_ref, w_ref, b_ref, o_ref):
    # (N, D) @ (D, 1) on the MXU, f32 accumulate, + scalar bias.
    o_ref[...] = (jnp.dot(x_ref[...], w_ref[...],
                          preferred_element_type=jnp.float32)
                  + b_ref[...]).astype(o_ref.dtype)


# ----------------------------------------------------------------------------
# Pure-JAX reference (un-folded, PyTorch-equivalent) for the fold + tolerance
# ----------------------------------------------------------------------------
def reference_forward(x, params):
    conv_w, conv_b, lin_w, lin_b, fc_w, fc_b = params
    conv = jax.lax.conv_general_dilated(
        x, conv_w, window_strides=(1, 1), padding=((1, 1), (1, 1)),
        dimension_numbers=("NCHW", "OIHW", "NCHW"))
    conv = conv + conv_b[None, :, None, None]
    t_flat = conv.reshape(x.shape[0], -1)     # Flatten(1,3): NCHW (c,h,w) order
    t1 = t_flat @ lin_w.T + lin_b
    t2 = t1                                   # AvgPool2d(kernel_size=1) == id
    t3 = t2 @ fc_w.T + fc_b
    return t3


# ----------------------------------------------------------------------------
# One-time parameter preparation: fold conv+linear+fc into (W_eff, b_eff)
# ----------------------------------------------------------------------------
def prepare_params(params, C_in, H, W):
    """The whole model is affine in x, so:
         out[n] = x[n].reshape(-1) @ W_eff + b_eff
       with W_eff = J^T (Jacobian of the 1-output affine map) and
       b_eff = model(0).  Both are computed once at init time."""
    zeros = jnp.zeros((1, C_in, H, W), jnp.float32)
    f = lambda xs: reference_forward(xs, params)
    b_eff = f(zeros)                                          # (1, 1)
    _, vjp_fn = jax.vjp(f, zeros)
    (w_img,) = vjp_fn(jnp.ones((1, 1), jnp.float32))          # (1, C_in, H, W)
    w_eff = w_img.reshape(C_in * H * W, 1).astype(jnp.float32)
    return w_eff, b_eff.astype(jnp.float32)


# ----------------------------------------------------------------------------
# Forward pass: single fused pallas_call (one block, one tiny matvec)
# ----------------------------------------------------------------------------
def model_forward(x, prepared):
    N, C_in, H, W = x.shape
    w_eff, b_eff = prepared
    D = C_in * H * W

    # NCHW flatten is contiguous -> pure reshape, no transpose, no extra HBM op.
    x_flat = x.reshape(N, D).astype(jnp.float32)

    return pl.pallas_call(
        _affine_kernel,
        out_shape=jax.ShapeDtypeStruct((N, 1), jnp.float32),
        grid=(1,),
        in_specs=[
            pl.BlockSpec((N, D), lambda i: (0, 0)),   # flattened input
            pl.BlockSpec((D, 1), lambda i: (0, 0)),   # folded effective weight
            pl.BlockSpec((1, 1), lambda i: (0, 0)),   # folded scalar bias
        ],
        out_specs=pl.BlockSpec((N, 1), lambda i: (0, 0)),
        compiler_params=pltpu.CompilerParams(
            dimension_semantics=("arbitrary",)),
    )(x_flat, w_eff, b_eff)


# ----------------------------------------------------------------------------
# Deterministic parameter init + run
# ----------------------------------------------------------------------------
def init_params(key, C_in, C_out, feat_in, hidden, out_dim):
    ks = jax.random.split(key, 6)
    conv_w = jax.random.normal(ks[0], (C_out, C_in, 3, 3), jnp.float32) * 0.05
    conv_b = jax.random.normal(ks[1], (C_out,), jnp.float32) * 0.05
    lin_w = jax.random.normal(ks[2], (hidden, feat_in), jnp.float32) * 0.02
    lin_b = jax.random.normal(ks[3], (hidden,), jnp.float32) * 0.02
    fc_w = jax.random.normal(ks[4], (out_dim, hidden), jnp.float32) * 0.05
    fc_b = jax.random.normal(ks[5], (out_dim,), jnp.float32) * 0.05
    return conv_w, conv_b, lin_w, lin_b, fc_w, fc_b


if __name__ == "__main__":
    key = jax.random.PRNGKey(0)
    k_x, k_p = jax.random.split(key)

    # Small shapes consistent with the forward pass.
    N, C_in, H, W = 2, 3, 8, 8
    C_out, hidden, out_dim = 64, 256, 1
    feat_in = C_out * H * W  # 4096 (see TODO about the original 5408)

    x = jax.random.normal(k_x, (N, C_in, H, W), jnp.float32)
    params = init_params(k_p, C_in, C_out, feat_in, hidden, out_dim)
    prepared = prepare_params(params, C_in, H, W)

    out = model_forward(x, prepared)
    jax.block_until_ready(out)
    assert out.shape == (N, out_dim) and out.dtype == jnp.float32

    # Tolerance check against the un-folded pure-JAX reference (the affine
    # fold only reorders f32 summation).
    ref = reference_forward(x, params)
    assert jnp.allclose(out, ref, rtol=2e-3, atol=2e-3), (out, ref)

    print("KERNEL_OK")
</pallas_src>

<mosaic_0001>
module attributes {stable_mosaic.version = 11 : i64} {
  func.func @_affine_kernel(%arg0: i32, %arg1: memref<2x192xf32, #tpu.memory_space<vmem>>, %arg2: memref<192x1xf32, #tpu.memory_space<vmem>>, %arg3: memref<1x1xf32, #tpu.memory_space<vmem>>, %arg4: memref<2x1xf32, #tpu.memory_space<vmem>>) attributes {dimension_semantics = [#tpu.dimension_semantics<arbitrary>], iteration_bounds = array<i64: 1>, scalar_prefetch = 0 : i64, scratch_operands = 0 : i64, tpu.core_type = #tpu.core_type<tc>, window_params = [{pipeline_mode = #tpu.pipeline_mode<synchronous>, transform_indices = @transform_0, window_bounds = array<i64: 2, 192>}, {pipeline_mode = #tpu.pipeline_mode<synchronous>, transform_indices = @transform_1, window_bounds = array<i64: 192, 1>}, {pipeline_mode = #tpu.pipeline_mode<synchronous>, transform_indices = @transform_2, window_bounds = array<i64: 1, 1>}, {pipeline_mode = #tpu.pipeline_mode<synchronous>, transform_indices = @transform_3, window_bounds = array<i64: 2, 1>}]} {
    %c0 = arith.constant 0 : index
    %c0_0 = arith.constant 0 : index
    %0 = vector.load %arg1[%c0, %c0_0] : memref<2x192xf32, #tpu.memory_space<vmem>>, vector<2x192xf32>
    %c0_1 = arith.constant 0 : index
    %c0_2 = arith.constant 0 : index
    %1 = vector.load %arg2[%c0_1, %c0_2] : memref<192x1xf32, #tpu.memory_space<vmem>>, vector<192x1xf32>
    %cst = arith.constant dense<0.000000e+00> : vector<2x1xf32>
    %2 = tpu.matmul %0, %1, %cst {dimension_numbers = #tpu.dot_dimension_numbers<[1], [0], [0], [1], [0, 0, 1, 1], [], []>} : vector<2x192xf32>, vector<192x1xf32>, vector<2x1xf32> -> vector<2x1xf32>
    %c0_3 = arith.constant 0 : index
    %c0_4 = arith.constant 0 : index
    %3 = vector.load %arg3[%c0_3, %c0_4] : memref<1x1xf32, #tpu.memory_space<vmem>>, vector<1x1xf32>
    %4 = vector.broadcast %3 : vector<1x1xf32> to vector<2x1xf32>
    %5 = arith.addf %2, %4 : vector<2x1xf32>
    %c0_5 = arith.constant 0 : index
    %c0_6 = arith.constant 0 : index
    %6 = vector.load %arg4[%c0_5, %c0_6] : memref<2x1xf32, #tpu.memory_space<vmem>>, vector<2x1xf32>
    tpu.vector_store %arg4[%c0_5, %c0_6], %5 {strides = array<i32>} : memref<2x1xf32, #tpu.memory_space<vmem>>, vector<2x1xf32>,
    return
  }
  func.func @transform_0(%arg0: i32) -> (i32, i32) {
    %c0_i32 = arith.constant 0 : i32
    %c0_i32_0 = arith.constant 0 : i32
    %c0_i32_1 = arith.constant 0 : i32
    return %c0_i32, %c0_i32_0 : i32, i32
  }
  func.func @transform_1(%arg0: i32) -> (i32, i32) {
    %c0_i32 = arith.constant 0 : i32
    %c0_i32_0 = arith.constant 0 : i32
    %c0_i32_1 = arith.constant 0 : i32
    return %c0_i32, %c0_i32_0 : i32, i32
  }
  func.func @transform_2(%arg0: i32) -> (i32, i32) {
    %c0_i32 = arith.constant 0 : i32
    %c0_i32_0 = arith.constant 0 : i32
    %c0_i32_1 = arith.constant 0 : i32
    return %c0_i32, %c0_i32_0 : i32, i32
  }
  func.func @transform_3(%arg0: i32) -> (i32, i32) {
    %c0_i32 = arith.constant 0 : i32
    %c0_i32_0 = arith.constant 0 : i32
    %c0_i32_1 = arith.constant 0 : i32
    return %c0_i32, %c0_i32_0 : i32, i32
  }
}

</mosaic_0001>

<bundles_post_ra>
// kernel: tpu_custom_call.1
= control target key start
LH: loop header
LB: loop body
LE: loop exit
PB: predicated region body
PF: predicated region fallthrough
CT: control target
= control target key end

     0   :  { %vm50_vm0 = vcmask 523264   ;;  %vm93_vm1 = vcmask 1024   ;;  %s202_s1 = inlined_call_operand.vmem [shape: f32[192,1], index: 1, kind: input, shape index: {}]   ;;  %s203_s2 = inlined_call_operand.<no memory space> [shape: f32[1,1], index: 2, kind: input, shape index: {}]   ;;  %s204_s0 = inlined_call_operand.vmem [shape: f32[2,192], index: 0, kind: input, shape index: {}]   ;;  %s205_s3 = inlined_call_operand.vmem [shape: f32[2,1], index: 3, kind: output, shape index: {}]  }
   0x1   :  { %v32_v0 = vld [vmem:[%s202_s1 + $0x78] sm:$0xff]  ;;  %v31_v1 = vld [vmem:[%s202_s1 + $0x70] sm:$0xff]  ;;  %v8_v2 = vstv %s203_s2  ;;  %v30_v3 = vld [vmem:[%s202_s1 + $0x68] sm:$0xff] }
   0x2   :  { %53 = vmatpush.msra.mxu0 %v32_v0  ;;  %9 = vst [vmem:[#allocation2] sm:$0x1] %v8_v2  ;;  %v40_v4 = vld [vmem:[%s202_s1 + $0xb8] sm:$0xff]  ;;  %v29_v5 = vld [vmem:[%s202_s1 + $0x60] sm:$0xff]  ;;  %v39_v6 = vld [vmem:[%s202_s1 + $0xb0] sm:$0xff] }
   0x3   :  { %81 = vmatpush.msra.mxu1 %v40_v4  ;;  %v38_v7 = vld [vmem:[%s202_s1 + $0xa8] sm:$0xff]  ;;  %v28_v8 = vld [vmem:[%s202_s1 + $0x58] sm:$0xff]  ;;  %v37_v9 = vld [vmem:[%s202_s1 + $0xa0] sm:$0xff] }
   0x4   :  { %54 = vmatpush.msra.mxu0 %v31_v1  ;;  %v16_v10 = vld [vmem:[%s204_s0] sm:$0xf]  ;;  %v27_v11 = vld [vmem:[%s202_s1 + $0x50] sm:$0xff]  ;;  %v36_v12 = vld [vmem:[%s202_s1 + $0x98] sm:$0xff] }
   0x5   :  { %82 = vmatpush.msra.mxu1 %v39_v6  ;;  %46 = vst [vmem:[#allocation1] ss:$4 sm:$0xff] %v16_v10  ;;  %v26_v13 = vld [vmem:[%s202_s1 + $0x48] sm:$0xff]  ;;  %v35_v14 = vld [vmem:[%s202_s1 + $0x90] sm:$0xff]  ;;  %v25_v15 = vld [vmem:[%s202_s1 + $0x40] sm:$0xff] }
   0x6   :  { %55 = vmatpush.msra.mxu0 %v30_v3  ;;  %v34_v16 = vld [vmem:[%s202_s1 + $0x88] sm:$0xff]  ;;  %v24_v17 = vld [vmem:[%s202_s1 + $0x38] sm:$0xff]  ;;  %v33_v18 = vld [vmem:[%s202_s1 + $0x80] sm:$0xff] }
   0x7   :  { %83 = vmatpush.msra.mxu1 %v38_v7  ;;  %v23_v19 = vld [vmem:[%s202_s1 + $0x30] sm:$0xff]  ;;  %v22_v21 = vld [vmem:[%s202_s1 + $0x28] sm:$0xff]  ;;  %v21_v22 = vld [vmem:[%s202_s1 + $0x20] sm:$0xff] }
   0x8   :  { %56 = vmatpush.msra.mxu0 %v29_v5  ;;  %v20_v23 = vld [vmem:[%s202_s1 + $0x18] sm:$0xff]  ;;  %v19_v24 = vld [vmem:[%s202_s1 + $0x10] sm:$0xff]  ;;  %v18_v25 = vld [vmem:[%s202_s1 + $0x8] sm:$0xff] }
   0x9   :  { %84 = vmatpush.msra.mxu1 %v37_v9  ;;  %v17_v26 = vld [vmem:[%s202_s1] sm:$0xff]  ;;  %v100_v28 = vld [vmem:[#allocation2] ss:$0 sm:$0xff] }
   0xa   :  { %57 = vmatpush.msra.mxu0 %v28_v8 }
   0xb   :  { %85 = vmatpush.msra.mxu1 %v36_v12 }
   0xc   :  { %58 = vmatpush.msra.mxu0 %v27_v11  ;;  %v48_v20 = vld.sshfl [vmem:[#allocation1 + $0x8] sm:$0xff pattern:$0x73625140]  ;;  %v47_v27 = vld.sshfl [vmem:[#allocation1] sm:$0xff pattern:$0x73625140] }
   0xd   :  { %86 = vmatpush.msra.mxu1 %v35_v14 }
   0xe   :  { %59 = vmatpush.msra.mxu0 %v26_v13 }
   0xf   :  { %87 = vmatpush.msra.mxu1 %v34_v16 }
  0x10   :  { %60 = vmatpush.msra.mxu0 %v25_v15 }
  0x11   :  { %88 = vmatpush.msra.mxu1 %v33_v18 }
  0x12   :  { %61 = vmatpush.msra.mxu0 %v24_v17  ;;  %99 = vmatmul.msk.f32.vlgmr.msra.gmra.mxu1 %vm50_vm0, %v48_v20 }
  0x14   :  { %62 = vmatpush.msra.mxu0 %v23_v19 }
  0x16   :  { %63 = vmatpush.msra.mxu0 %v22_v21 }
  0x18   :  { %64 = vmatpush.msra.mxu0 %v21_v22 }
  0x1a   :  { %65 = vmatpush.msra.mxu0 %v20_v23 }
  0x1c   :  { %66 = vmatpush.msra.mxu0 %v19_v24 }
  0x1e   :  { %67 = vmatpush.msra.mxu0 %v18_v25 }
  0x20   :  { %68 = vmatpush.msra.mxu0 %v17_v26 }
  0x21   :  { %69 = vmatmul.f32.vlgmr.msra.gmra.mxu0 %v47_v27 }
  0x8f   :  { %v90_v30 = vpop.f32.mrf.mxu1 }
  0x9e   :  { %v70_v29 = vpop.f32.mrf.mxu0 }
  0x9f   :  { %v71_v31 = vadd.f32 %v100_v28, %v70_v29 }
  0xa1   :  { %v91_v32 = vadd.f32 %v90_v30, %v71_v31 }
  0xa3   :  { %94 = vst.msk [vmem:[%s205_s3] sm:$0x3] %vm93_vm1, %v91_v32 }

</bundles_post_ra>
